<compile_context>
chip_gen: v5e
topology: v5e:2x2
jax: 0.10.0
libtpu: 0.0.40
codegen_flags: <defaults>
</compile_context>

<pallas_src>
import functools

import jax
import jax.numpy as jnp
from jax.experimental import pallas as pl
from jax.experimental.pallas import tpu as pltpu


def _round_up(x, m):
    return (x + m - 1) // m * m


def _cdiv(a, b):
    return -(-a // b)


def _tpu_budget():
    """Best-effort per-core VMEM capacity + device-kind string (trace-time)."""
    vmem_cap = None
    try:
        vmem_cap = int(pltpu.get_tpu_info().vmem_capacity_bytes)
    except Exception:
        vmem_cap = None
    kind = ""
    try:
        kind = jax.devices()[0].device_kind.lower()
    except Exception:
        pass
    if vmem_cap is None:
        # Conservative fallbacks: 128 MiB on v5*/v6*, else assume 64 MiB (v7x).
        vmem_cap = 128 * 1024 * 1024 if ("v5" in kind or "v6" in kind) else 64 * 1024 * 1024
    return vmem_cap, kind


def _generator_kernel(x_ref, w_ref, b_ref, o_ref, m_ref, l_ref, *,
                      nv, tv, compute_dtype):
    # x_ref: (tm, D) input dtype   w_ref: (D, tv) bf16   b_ref: (1, tv) f32
    # o_ref: (tm, v_pad) out_dtype  -- resident across the vocab grid axis
    # m_ref/l_ref: (tm, 1) f32 scratch -- online max / sum-exp accumulators.
    j = pl.program_id(1)

    # In-kernel cast of the activations (removes a separate XLA cast pass).
    x = x_ref[...].astype(compute_dtype)
    # bf16 x bf16 MXU matmul with f32 accumulation; bias add in f32.
    s = jnp.dot(x, w_ref[...], preferred_element_type=jnp.float32) + b_ref[...]

    if nv == 1:
        # Whole vocab fits in one tile: single-pass softmax, write final values.
        m = jnp.max(s, axis=-1, keepdims=True)
        l = jnp.sum(jnp.exp(s - m), axis=-1, keepdims=True)
        o_ref[...] = (s - (m + jnp.log(l))).astype(o_ref.dtype)
    else:
        @pl.when(j == 0)
        def _init():
            m_ref[...] = jnp.full(m_ref.shape, -jnp.inf, dtype=m_ref.dtype)
            l_ref[...] = jnp.zeros(l_ref.shape, dtype=l_ref.dtype)

        # Stash raw logits for this vocab tile into the resident output slab.
        # Statically unrolled pl.when branches -> static, 128-aligned slices
        # (no dynamic indexing on the lane dimension).
        sv = s.astype(o_ref.dtype)
        for c in range(nv):
            @pl.when(j == c)
            def _store(c=c):
                o_ref[:, c * tv:(c + 1) * tv] = sv

        # Online max / log-sum-exp update (all f32; v5e-safe).
        m_prev = m_ref[...]
        m_new = jnp.maximum(m_prev, jnp.max(s, axis=-1, keepdims=True))
        l_ref[...] = (l_ref[...] * jnp.exp(m_prev - m_new)
                      + jnp.sum(jnp.exp(s - m_new), axis=-1, keepdims=True))
        m_ref[...] = m_new

        @pl.when(j == nv - 1)
        def _finalize():
            lse = m_ref[...] + jnp.log(l_ref[...])
            # Slab values are already out_dtype-rounded; subtract in out_dtype
            # (no f32 round-trip over the whole (tm, v_pad) slab).
            o_ref[...] = o_ref[...] - lse.astype(o_ref.dtype)


def prepare_generator_params(weight, bias, compute_dtype=jnp.bfloat16, tv_max=2048):
    """One-time parameter prep; keep this OUT of the per-call hot path.

    weight: (vocab, d_model) PyTorch nn.Linear layout, bias: (vocab,)
    Returns (w_t, b2, vocab, tv):
      w_t: (d_model, v_pad) in compute_dtype
      b2:  (1, v_pad) f32; padded columns get -1e30 so they never affect the LSE.
    When vocab is a multiple of 128, tv is chosen as the largest 128-multiple
    divisor of vocab (<= tv_max) so v_pad == vocab and no output slice is needed.
    """
    vocab, d_model = weight.shape
    cap = max(128, (tv_max // 128) * 128)
    if vocab % 128 == 0:
        tv = 128
        for cand in range(cap, 127, -128):
            if vocab % cand == 0:
                tv = cand
                break
        v_pad = vocab
    else:
        tv = min(_round_up(vocab, 128), cap)
        v_pad = _round_up(vocab, tv)

    w_t = jnp.zeros((d_model, v_pad), dtype=compute_dtype)
    w_t = w_t.at[:, :vocab].set(weight.T.astype(compute_dtype))
    b2 = jnp.full((1, v_pad), -1e30, dtype=jnp.float32)
    b2 = b2.at[:, :vocab].set(bias.astype(jnp.float32))
    return w_t, b2, vocab, tv


@functools.partial(jax.jit, static_argnames=("vocab", "tv", "tm", "out_dtype"))
def generator_forward(x, w_t, b2, *, vocab, tv, tm=None, out_dtype=None):
    """log_softmax(x @ W.T + b, axis=-1) with W/b pre-prepared by
    prepare_generator_params. Output dtype follows x.dtype unless out_dtype given."""
    *lead, d_model = x.shape
    v_pad = w_t.shape[1]
    nv = v_pad // tv
    if out_dtype is None:
        out_dtype = x.dtype
    out_dtype = jnp.dtype(out_dtype)
    out_itemsize = out_dtype.itemsize
    x_itemsize = jnp.dtype(x.dtype).itemsize
    w_itemsize = jnp.dtype(w_t.dtype).itemsize

    x2 = x.reshape(-1, d_model)        # no cast, no pad: cast is in-kernel,
    M = x2.shape[0]                    # ragged last row tile handled by the grid.

    vmem_cap, kind = _tpu_budget()
    # Target row tile by generation: v6e's 128 MiB + ~650 flop/B crossover wants
    # a big tm; v7x (64 MiB, 3.2 TB/s) and v5e are fine at ~384.
    if "v5" in kind:
        tm_target = 384
    elif vmem_cap <= 80 * 1024 * 1024:     # v7x-class
        tm_target = 384
    else:                                  # v6e-class
        tm_target = 640

    if tm is None:
        # Fit tm against ~75% of VMEM: double-buffered weight/bias tiles are
        # fixed cost; the resident output slab and x tile scale with tm and are
        # double-buffered by the BlockSpec pipeline.
        budget = int(vmem_cap * 0.75)
        fixed = 2 * d_model * tv * w_itemsize + 2 * tv * 4
        per_row = 2 * v_pad * out_itemsize + 2 * d_model * x_itemsize + 2 * 128 * 4
        tm_fit = max(8, ((budget - fixed) // max(1, per_row)) // 8 * 8)
        tm = min(tm_target, tm_fit)
    tm = max(8, (int(tm) // 8) * 8)

    # Keep both TensorCores fed on small M: shrink tm (multiple of 8) so nm >= 2
    # instead of padding tiny M up to one big tile.
    if 16 <= M < 2 * tm:
        tm = max(8, _round_up(_cdiv(M, 2), 8))
    tm = min(tm, _round_up(M, 8))
    nm = _cdiv(M, tm)

    # Explicit scoped-VMEM limit from the actual tile footprint, clamped below
    # the physical per-core capacity (v7x is only 64 MiB).
    est = (2 * tm * d_model * x_itemsize        # x tiles (double-buffered)
           + 2 * d_model * tv * w_itemsize      # weight tiles
           + 2 * tv * 4                         # bias tiles
           + 2 * tm * v_pad * out_itemsize      # resident output slab (2 buffers)
           + 2 * tm * 128 * 4)                  # f32 scratch (lane-padded)
    vmem_limit = int(min(int(0.85 * vmem_cap),
                         max(32 * 1024 * 1024, int(est * 1.25))))

    out = pl.pallas_call(
        functools.partial(_generator_kernel, nv=nv, tv=tv,
                          compute_dtype=w_t.dtype),
        out_shape=jax.ShapeDtypeStruct((M, v_pad), out_dtype),
        grid_spec=pltpu.PrefetchScalarGridSpec(
            num_scalar_prefetch=0,
            grid=(nm, nv),                       # reduction (vocab) axis last
            in_specs=[
                pl.BlockSpec((tm, d_model), lambda i, j: (i, 0)),   # x rows
                pl.BlockSpec((d_model, tv), lambda i, j: (0, j)),   # weight tile
                pl.BlockSpec((1, tv), lambda i, j: (0, j)),         # bias tile
            ],
            out_specs=pl.BlockSpec((tm, v_pad), lambda i, j: (i, 0)),
            scratch_shapes=[
                pltpu.VMEM((tm, 1), jnp.float32),   # running max
                pltpu.VMEM((tm, 1), jnp.float32),   # running sum-exp
            ],
        ),
        compiler_params=pltpu.CompilerParams(
            dimension_semantics=("parallel", "arbitrary"),
            vmem_limit_bytes=vmem_limit,
        ),
    )(x2, w_t, b2)

    if v_pad != vocab:
        # Only hit when vocab is not a multiple of 128.
        out = out[:, :vocab]
    return out.reshape(*lead, vocab)


if __name__ == "__main__":
    # Small shapes consistent with the module's forward.
    batch, seq, d_model, vocab = 2, 8, 32, 128

    key = jax.random.PRNGKey(0)
    kx, kw, kb = jax.random.split(key, 3)

    x = jax.random.normal(kx, (batch, seq, d_model), dtype=jnp.float32)
    bound = 1.0 / (d_model ** 0.5)
    weight = jax.random.uniform(kw, (vocab, d_model), minval=-bound, maxval=bound,
                                dtype=jnp.float32)
    bias = jax.random.uniform(kb, (vocab,), minval=-bound, maxval=bound,
                              dtype=jnp.float32)

    # One-time parameter preparation (out of the per-call hot path).
    w_t, b2, v, tv = prepare_generator_params(weight, bias)

    out = generator_forward(x, w_t, b2, vocab=v, tv=tv)
    jax.block_until_ready(out)
    assert out.shape == (batch, seq, vocab)

    # Reference with matching bf16 matmul operands (f32 accumulation + f32 softmax).
    logits_ref = jnp.dot(x.astype(jnp.bfloat16), weight.T.astype(jnp.bfloat16),
                         preferred_element_type=jnp.float32) + bias
    ref = jax.nn.log_softmax(logits_ref, axis=-1)
    assert jnp.allclose(out, ref, atol=1e-3, rtol=1e-3), \
        float(jnp.max(jnp.abs(out - ref)))

    # Looser sanity check against the pure-f32 PyTorch-equivalent reference.
    ref_f32 = jax.nn.log_softmax(x @ weight.T + bias, axis=-1)
    assert jnp.allclose(out, ref_f32, atol=5e-2, rtol=5e-2)

    print("KERNEL_OK")
</pallas_src>

<mosaic_0001>
module attributes {stable_mosaic.version = 11 : i64} {
  func.func @_generator_kernel(%arg0: i32, %arg1: i32, %arg2: memref<8x32xf32, #tpu.memory_space<vmem>>, %arg3: memref<32x128xbf16, #tpu.memory_space<vmem>>, %arg4: memref<1x128xf32, #tpu.memory_space<vmem>>, %arg5: memref<8x128xf32, #tpu.memory_space<vmem>>, %arg6: memref<8x1xf32, #tpu.memory_space<vmem>>, %arg7: memref<8x1xf32, #tpu.memory_space<vmem>>) attributes {dimension_semantics = [#tpu.dimension_semantics<parallel>, #tpu.dimension_semantics<arbitrary>], iteration_bounds = array<i64: 2, 1>, scalar_prefetch = 0 : i64, scratch_operands = 2 : i64, tpu.core_type = #tpu.core_type<tc>, window_params = [{transform_indices = @transform_0, window_bounds = array<i64: 8, 32>}, {transform_indices = @transform_1, window_bounds = array<i64: 32, 128>}, {transform_indices = @transform_2, window_bounds = array<i64: 1, 128>}, {transform_indices = @transform_3, window_bounds = array<i64: 8, 128>}]} {
    %c0 = arith.constant 0 : index
    %c0_0 = arith.constant 0 : index
    %0 = vector.load %arg2[%c0, %c0_0] : memref<8x32xf32, #tpu.memory_space<vmem>>, vector<8x32xf32>
    %1 = arith.truncf %0 : vector<8x32xf32> to vector<8x32xbf16>
    %c0_1 = arith.constant 0 : index
    %c0_2 = arith.constant 0 : index
    %2 = vector.load %arg3[%c0_1, %c0_2] : memref<32x128xbf16, #tpu.memory_space<vmem>>, vector<32x128xbf16>
    %cst = arith.constant dense<0.000000e+00> : vector<8x128xf32>
    %3 = tpu.matmul %1, %2, %cst {dimension_numbers = #tpu.dot_dimension_numbers<[1], [0], [0], [1], [0, 0, 1, 1], [], []>} : vector<8x32xbf16>, vector<32x128xbf16>, vector<8x128xf32> -> vector<8x128xf32>
    %c0_3 = arith.constant 0 : index
    %c0_4 = arith.constant 0 : index
    %4 = vector.load %arg4[%c0_3, %c0_4] : memref<1x128xf32, #tpu.memory_space<vmem>>, vector<1x128xf32>
    %5 = vector.broadcast %4 : vector<1x128xf32> to vector<8x128xf32>
    %6 = arith.addf %3, %5 : vector<8x128xf32>
    %cst_5 = arith.constant dense<0xFF800000> : vector<8xf32>
    %7 = vector.multi_reduction <maximumf>, %6, %cst_5 [1] : vector<8x128xf32> to vector<8xf32>
    %8 = vector.shape_cast %7 : vector<8xf32> to vector<8x1xf32>
    %9 = vector.broadcast %8 : vector<8x1xf32> to vector<8x128xf32>
    %10 = arith.subf %6, %9 : vector<8x128xf32>
    %11 = math.exp %10 : vector<8x128xf32>
    %cst_6 = arith.constant dense<0.000000e+00> : vector<8xf32>
    %12 = vector.multi_reduction <add>, %11, %cst_6 [1] : vector<8x128xf32> to vector<8xf32>
    %13 = vector.shape_cast %12 : vector<8xf32> to vector<8x1xf32>
    %14 = math.log %13 : vector<8x1xf32>
    %15 = arith.addf %8, %14 : vector<8x1xf32>
    %16 = vector.broadcast %15 : vector<8x1xf32> to vector<8x128xf32>
    %17 = arith.subf %6, %16 : vector<8x128xf32>
    %c0_7 = arith.constant 0 : index
    %c0_8 = arith.constant 0 : index
    %18 = vector.load %arg5[%c0_7, %c0_8] : memref<8x128xf32, #tpu.memory_space<vmem>>, vector<8x128xf32>
    tpu.vector_store %arg5[%c0_7, %c0_8], %17 {strides = array<i32>} : memref<8x128xf32, #tpu.memory_space<vmem>>, vector<8x128xf32>,
    return
  }
  func.func @transform_0(%arg0: i32, %arg1: i32) -> (i32, i32) {
    %c0_i32 = arith.constant 0 : i32
    %c0_i32_0 = arith.constant 0 : i32
    return %arg0, %c0_i32 : i32, i32
  }
  func.func @transform_1(%arg0: i32, %arg1: i32) -> (i32, i32) {
    %c0_i32 = arith.constant 0 : i32
    %c0_i32_0 = arith.constant 0 : i32
    return %c0_i32, %arg1 : i32, i32
  }
  func.func @transform_2(%arg0: i32, %arg1: i32) -> (i32, i32) {
    %c0_i32 = arith.constant 0 : i32
    %c0_i32_0 = arith.constant 0 : i32
    return %c0_i32, %arg1 : i32, i32
  }
  func.func @transform_3(%arg0: i32, %arg1: i32) -> (i32, i32) {
    %c0_i32 = arith.constant 0 : i32
    %c0_i32_0 = arith.constant 0 : i32
    return %arg0, %c0_i32 : i32, i32
  }
}

</mosaic_0001>

<bundles_post_ra>
// kernel: generator_forward.1
= control target key start
LH: loop header
LB: loop body
LE: loop exit
PB: predicated region body
PF: predicated region fallthrough
CT: control target
= control target key end

     0   :  { %8 = vsyncpa [#allocation5], 0  ;;  %s836_s0 = inlined_call_operand.hbm [shape: f32[16,32], index: 0, kind: input, shape index: {}]   ;;  %s837_s1 = inlined_call_operand.hbm [shape: bf16[32,128], index: 1, kind: input, shape index: {}]   ;;  %s838_s2 = inlined_call_operand.vmem [shape: f32[1,128], index: 2, kind: input, shape index: {}]   ;;  %s839_s3 = inlined_call_operand.hbm [shape: f32[16,128], index: 3, kind: output, shape index: {}]  }
   0x1   :  { %10 = vsyncpa [#allocation5 + $0x1], 0 }
   0x2   :  { %11 = vsyncpa [#allocation8], 0 }
   0x3   :  { %12 = vsyncpa [#allocation6], 0 }
   0x4   :  { %14 = vsyncpa [#allocation6 + $0x1], 0  ;;  %s686_s12 = smov 0   ;;  %s688_s13 = smov 0  }
   0x5   :  { %s690_s14 = smov 0   ;;  %s692_s15 = smov 0  }
   0x6   :  { %s694_s16 = smov 0   ;;  %s696_s17 = smov 0  }
   0x7 LB: > { %s408_s18 = sadd.s32 4294967295, %s661_s17   ;;  %p410_p0 = scmp.ge.s32.totalorder %s661_s17, 1  ;;  %s661_s17 = sphi %s696_s17, %s20_s17   ;;  %s657_s16 = sphi %s694_s16, %s850_s16   ;;  %s653_s15 = sphi %s692_s15, %s849_s15   ;;  %s649_s14 = sphi %s690_s14, %s848_s14   ;;  %s645_s13 = sphi %s688_s13, %s847_s13   ;;  %s641_s12 = sphi %s686_s12, %s846_s12  }
   0x8   : > { %p718_p1 = scmp.eq.s32.totalorder %s408_s18, 0  ;;  %p141_p2 = scmp.lt.s32.totalorder %s661_s17, 3 }
   0x9   : > { %s154_s22 = sshll.u32 %s837_s1, 4  ;;  %s663_s24 = smov [#allocation7]   ;;  %s155_s22 = int_to_ptr.hbm [resolvable:$true] %s154_s22 }
   0xa   : > { %p726_p3 = pnand %p410_p0, %p141_p2  ;;  %s156_s25 = sshll.u32 %s663_s24, 4  ;;  %s157_s25 = int_to_ptr.vmem [resolvable:$true] %s156_s25 }
   0xb   : > { %p413_p6 = scmp.ge.s32.totalorder %s661_s17, 2  ;;  %s664_s26 = smov 64  }
   0xc   : > { %p443_p4 = pneg %p726_p3  ;;  %s665_s27 = smov 4  }
   0xd   : > { %s409_s28 = sadd.s32 4294967294, %s661_s17   ;;  %s32_s29 = sadd.s32 1, %s657_s16 }
   0xe   : > { %p444_p5 = pnand %p443_p4, %p718_p1  ;;  %s39_s30 = sadd.s32 1, %s649_s14 }
   0xf   : > { %p34_p7 = scmp.ge.s32.totalorder %s32_s29, 2  ;;  %p46_p8 = scmp.ne.s32.totalorder %s649_s14, %s645_s13 }
  0x10   : > { %446 = dma.hbm_to_vmem [thread:$0]  (!%p444_p5), %s155_s22, 256, %s157_s25, [#allocation8], %s664_s26, %s664_s26, %s665_s27  }
  0x11   : > { %p47_p9 = scmp.eq.s32.totalorder %s661_s17, 0  ;;  %p52_p10 = scmp.ne.s32.totalorder %s645_s13, %s641_s12 }
  0x12   : > { %s852_s29 = smov (%p34_p7, %s32_s29), 0  ;;  %p128_p13 = scmp.eq.s32.totalorder %s408_s18, 1 }
  0x13   : > { %p745_p11 = por %p47_p9, %p46_p8  ;;  %p751_p12 = por %p718_p1, %p52_p10 }
  0x14   : > { %s36_s6 = ssub.s32 %s657_s16, %s852_s29  ;;  %p134_p2 = scmp.eq.s32.totalorder %s409_s28, 1 }
  0x15   : > { %p37_p0 = scmp.eq.s32.totalorder %s36_s6, 0  ;;  %p757_p4 = por %p128_p13, %p46_p8 }
  0x16   : > { %p456_p5 = scmp.lt.s32.totalorder %s661_s17, 2  ;;  %p765_p7 = por %p134_p2, %p52_p10 }
  0x17   : > { %s763_s8 = scalar_select %p37_p0, %s649_s14, %s39_s30  }
  0x18   : > { %s176_s10 = sand.u32 1, %s649_s14   ;;  %s415_s20 = sshll.u32 %s657_s16, 3 }
  0x19   : > { %s414_s11 = sshll.u32 %s176_s10, 3  ;;  %s184_s18 = scalar_lea.hbm %s836_s0, %s415_s20 }
  0x1a   : > { %s180_s24 = scalar_lea.vmem [#allocation4], %s414_s11  ;;  %s186_s26 = sshll.u32 %s184_s18, 4  ;;  %s187_s26 = int_to_ptr.hbm [resolvable:$true] %s186_s26 }
  0x1b   : > { %s188_s25 = sshll.u32 %s180_s24, 4  ;;  %p448_p8 = pnand %p456_p5, %p745_p11  ;;  %s189_s25 = int_to_ptr.vmem [resolvable:$true] %s188_s25 }
  0x1c   : > { %s177_s27 = scalar_lea.sflag [#allocation5], %s176_s10  ;;  %197 = sbr.rel (%p726_p3) target bundleno = 431 (0x1af), region = 32 }
  0x1d   : > { %450 = dma.hbm_to_vmem [thread:$0]  (!%p448_p8), %s187_s26, 128, %s189_s25, %s177_s27  }
  0x1e   : > { %s779_s28 = sand.u32 (!%p726_p3), 1, %s645_s13  }
  0x1f   : > { %s417_s30 = sshll.u32 (!%p726_p3), %s779_s28, 3  ;;  %s200_s6 = scalar_lea.sflag (!%p726_p3), [#allocation5], %s779_s28 }
  0x20   : > { %s203_s11 = scalar_lea.vmem (!%p726_p3), [#allocation4], %s417_s30 }
  0x21   : > { %628 = dma.done.wait (%p751_p12), %s200_s6, 128  }
  0x22   : > { %630 = vsyncadd (%p751_p12), %s200_s6, 4294967168 }
  0x23   : > { %632 = dma.done.wait (%p718_p1), [#allocation8], 256  }
  0x24   : > { %634 = vsyncadd (%p718_p1), [#allocation8], 4294967040  ;;  %v434_v0 = vld [vmem:[#allocation7 + $0x8] sm:$0xff]  ;;  %v433_v1 = vld [vmem:[#allocation7] sm:$0xff]  ;;  %vm261_vm0 = vcmask 261120   ;;  %s430_s19 = sshll.u32 %s653_s15, 3 }
  0x25   : > { %271 = vmatpush.bf16.msra.mxu0 %v434_v0  ;;  %v239_v2 = vld [vmem:[%s203_s11] sm:$0xff]  ;;  %s301_s20 = scalar_lea.hbm %s839_s3, %s430_s19  ;;  %s234_s21 = scalar_lea.vmem [#allocation9], %s417_s30 }
  0x26   : > { %v240_v3 = vpack.c.bf16 %v239_v2, %v239_v2  ;;  %v510_v4 = vld [vmem:[%s838_s2] ss:$0 sm:$0xff]  ;;  %s303_s22 = sshll.u32 %s234_s21, 4  ;;  %s305_s18 = sshll.u32 %s301_s20, 4  ;;  %s304_s22 = int_to_ptr.vmem [resolvable:$true] %s303_s22  ;;  %s306_s18 = int_to_ptr.hbm [resolvable:$true] %s305_s18 }
  0x27   : > { %s291_s24 = scalar_lea.sflag [#allocation6], %s779_s28  ;;  %s589_s25 = sshra.s32 %s306_s18, 4  ;;  %s590_s25 = int_to_ptr.hbm [resolvable:$true] %s589_s25 }
  0x28   : > { %s591_s15 = scalar_lea.hbm %s590_s25, 8  ;;  %s595_s6 = scalar_lea.hbm %s839_s3, 16 }
  0x29   : > { %272 = vmatpush.bf16.msra.mxu0 %v433_v1  ;;  %p592_p1 = scmp.ne.s32.totalorder %s590_s25, %s591_s15  ;;  %p596_p10 = scmp.lt.s32.totalorder %s590_s25, %s839_s3 }
  0x2a   : > { %p597_p11 = scmp.lt.s32.totalorder %s595_s6, %s591_s15 }
  0x2b   : > { %p593_p3 = pnand %p592_p1, %p757_p4 }
  0x2c   : > { %428 = vmatmul.msk.bf16.vlgmr.msra.gmra.mxu0 %vm261_vm0, %v240_v3  ;;  %p598_p12 = por %p597_p11, %p596_p10 }
  0x2d   : > { %p594_p9 = pneg %p593_p3 }
  0x2f   : > { %p599_p13 = pnand %p598_p12, %p594_p9 }
  0xa9   : > { %v274_v5 = vpop.f32.mrf.mxu0 }
  0xaa   : > { %v275_v6 = vadd.f32 %v510_v4, %v274_v5 }
  0xac   : > { %278 = vmax.xlane.f32.xlu0 %v275_v6 }
  0xb1   : > { %v276_v7 = vpop.f32.mrf.mxu0 }
 0x11f   : > { %v279_v8 = vpop.xlane.xlu0 %278 }
 0x120   : > { %v280_v9 = vsub.f32 %v275_v6, %v279_v8 }
 0x122   : > { %v281_v10 = vmul.f32 1.442695, %v280_v9 }
 0x124   : > { %511 = vpow2.f32 %v281_v10 }
 0x12a   : > { %v512_v11 = vpop.eup %511 }
 0x12b   : > { %283 = vadd.xlane.f32.xlu0 %v512_v11 }
 0x19e   : > { %v284_v12 = vpop.xlane.xlu0 %283 }
 0x19f   : > { %513 = vlog2.f32 %v284_v12 }
 0x1a5   : > { %v514_v13 = vpop.eup %513 }
 0x1a6   : > { %v286_v14 = vmul.f32 0.6931472, %v514_v13 }
 0x1a8   : > { %v287_v15 = vadd.f32 %v286_v14, %v279_v8 }
 0x1aa   : > { %v288_v16 = vsub.f32 %v275_v6, %v287_v15 }
 0x1ac   : > { %289 = vst [vmem:[%s234_s21] sm:$0xff] %v288_v16 }
 0x1ad   : > { %602 = shalt.err (!%p599_p13)
}
 0x1ae   : > { %441 = dma.vmem_to_hbm [thread:$0]  (%p757_p4), %s304_s22, 128, %s306_s18, %s291_s24  }
 0x1af PF: > { %s317_s28 = sand.u32 1, %s641_s12   ;;  %p452_p0 = pnand %p413_p6, %p765_p7 }
 0x1b0   : > { %s318_s23 = scalar_lea.sflag [#allocation6], %s317_s28 }
 0x1b1   : > { %p453_p2 = pneg %p452_p0 }
 0x1b3   : > { %636 = dma.done.wait (%p453_p2), %s318_s23, 128  }
 0x1b4   : > { %638 = vsyncadd (%p453_p2), %s318_s23, 4294967168  ;;  %s20_s17 = sadd.s32 1, %s661_s17   ;;  %s846_s12 = smov %s645_s13 }
 0x1b5   : > { %p17_p5 = scmp.ge.s32.totalorder %s20_s17, 4   ;;  %s847_s13 = smov %s649_s14 }
 0x1b6   : > { %s848_s14 = smov %s763_s8  ;;  %s849_s15 = smov %s657_s16 }
 0x1b7   : > { %s850_s16 = smov %s852_s29  ;;  %19 = sbr.rel (!%p17_p5) target bundleno = 7 (0x7), region = 85 }
 0x1bc   :  { %324 = vsyncpa [#allocation5], 1 }
 0x1bd   :  { %326 = vsyncpa [#allocation5 + $0x1], 1 }
 0x1be   :  { %327 = vsyncpa [#allocation8], 1 }
 0x1bf   :  { %328 = vsyncpa [#allocation6], 1 }
 0x1c0   :  { %330 = vsyncpa [#allocation6 + $0x1], 1 }

</bundles_post_ra>
